<compile_context>
chip_gen: v6e
topology: v6e:2x2x1
jax: 0.10.0
libtpu: 0.0.40
codegen_flags: <defaults>
</compile_context>

<pallas_src>
import functools
import math

import jax
import jax.numpy as jnp
from jax import lax
from jax.experimental import pallas as pl
from jax.experimental.pallas import tpu as pltpu

_INV_SQRT2 = 1.0 / math.sqrt(2.0)
_GELU_TANH_C = math.sqrt(2.0 / math.pi)
# Contract the last dim of both operands (A @ B^T), as in flash-attention.
_TRANS_B_DIM_NUMBERS = (((1,), (1,)), ((), ()))


def _round_up(n, m):
    return (n + m - 1) // m * m


def _cdiv(a, b):
    return -(-a // b)


def _vmem_capacity_bytes():
    try:
        info = pltpu.get_tpu_info()
        cap = getattr(info, "vmem_capacity_bytes", None)
        if cap:
            return int(cap)
    except Exception:
        pass
    return 64 * 2 ** 20  # conservative (v7x per-TensorCore VMEM)


def _esm_mlp_kernel(x_ref, w1t_ref, b1_ref, w2_ref, b2_ref, o_ref, *,
                    chunk, approx_gelu):
    """One batch tile of the fused MLP head, chunked over the hidden dim.

    x_ref   : (TB, d_model)   native dtype  CLS-token activations
    w1t_ref : (DHp, d_model)  bf16          fc1 weight (PyTorch [out, in])
    b1_ref  : (DHp, 1)        f32           fc1 bias (column)
    w2_ref  : (DHp, 1)        f32           fc2 weight with eval-BN folded in
    b2_ref  : (1, 1)          f32  (SMEM)   fc2 bias with eval-BN folded in
    o_ref   : (1, TB)         f32           sigmoid probabilities (lane-dense)
    """
    tb = x_ref.shape[0]
    dh_pad = w1t_ref.shape[0]
    n_chunks = dh_pad // chunk

    # Cast activations to bf16 in-kernel (MXU operands); no wrapper HBM pass.
    xb = x_ref[...].astype(jnp.bfloat16)                       # (TB, Dm)

    def dh_chunk(c, acc):
        off = pl.multiple_of(c * chunk, chunk)
        w1c = w1t_ref[pl.ds(off, chunk), :]                    # (C, Dm) bf16
        # fc1 on the MXU, computed transposed (h[c,b] = sum_k w1[c,k]*x[b,k])
        # so per-channel bias/scale broadcast over lanes and the reduction
        # lands in a lane-dense (1, TB) accumulator.
        h = lax.dot_general(w1c, xb, _TRANS_B_DIM_NUMBERS,
                            preferred_element_type=jnp.float32)  # (C, TB) f32
        h = h + b1_ref[pl.ds(off, chunk), :]
        if approx_gelu:
            # tanh-approx GELU: transcendental goes to the EUP slot (v6e/v7x).
            inner = _GELU_TANH_C * (h + 0.044715 * h * h * h)
            h = 0.5 * h * (1.0 + jnp.tanh(inner))
        else:
            # Exact erf GELU, matching torch.nn.GELU() default.
            h = 0.5 * h * (1.0 + lax.erf(h * _INV_SQRT2))
        # Folded BN + fc2: per-channel scale then sublane (XLU) reduction.
        return acc + jnp.sum(h * w2_ref[pl.ds(off, chunk), :],
                             axis=0, keepdims=True)             # (1, TB)

    acc = lax.fori_loop(0, n_chunks, dh_chunk,
                        jnp.zeros((1, tb), jnp.float32),
                        unroll=(n_chunks <= 8))

    y = acc + b2_ref[0, 0]                                      # SMEM scalar
    # sigmoid (exact division; reciprocal on the EUP slot would be approx).
    o_ref[...] = pl.reciprocal(1.0 + jnp.exp(-y)).astype(o_ref.dtype)


def prepare_params(params, eps=1e-5):
    """One-time parameter prep (hoisted out of the per-call path):
    fold eval-mode BatchNorm1d + Dropout(identity) into fc2, pad the hidden
    dim to a lane multiple, cast fc1 weight to bf16."""
    w1, b1, gamma, beta, run_mean, run_var, w2, b2 = params
    f32 = jnp.float32
    d_hidden = w1.shape[0]                       # PyTorch Linear layout [out, in]

    s = gamma.astype(f32) * lax.rsqrt(run_var.astype(f32) + eps)          # (DH,)
    t = beta.astype(f32) - run_mean.astype(f32) * s                       # (DH,)
    w2_vec = w2.astype(f32).reshape(-1)                                   # (DH,)
    w2_fold = w2_vec * s                                                  # (DH,)
    b2_fold = (b2.astype(f32).reshape(-1) + jnp.sum(t * w2_vec)).reshape(1, 1)

    dh_pad = _round_up(d_hidden, 128)            # zero rows contribute nothing
    pad_h = dh_pad - d_hidden
    w1t = jnp.pad(w1.astype(jnp.bfloat16), ((0, pad_h), (0, 0)))          # (DHp, Dm)
    b1c = jnp.pad(b1.astype(f32), (0, pad_h)).reshape(dh_pad, 1)          # (DHp, 1)
    w2c = jnp.pad(w2_fold, (0, pad_h)).reshape(dh_pad, 1)                 # (DHp, 1)
    return w1t, b1c, w2c, b2_fold


def esm_mlp_forward(x, prepped, *, tb_max=512, approx_gelu=False):
    """x: [B, d_model] CLS-token representations. Returns [B, 1] probabilities."""
    w1t, b1c, w2c, b2_fold = prepped
    B, d_model = x.shape
    dh_pad = w1t.shape[0]

    # ---- batch tiling: >=2 grid steps when there is enough work (so the
    # "parallel" axis can split across v7x's two TensorCores) and bounded
    # padding waste. Small-B single tile is exact (tb rounded to 8 sublanes).
    n_tiles = max(1, _cdiv(B, tb_max))
    if B > 128:
        n_tiles = max(n_tiles, 2)
    tb = _round_up(_cdiv(B, n_tiles), 128)
    tb = min(tb, _round_up(B, 8))
    grid = _cdiv(B, tb)
    b_pad = grid * tb                             # output is padded, x is NOT

    # ---- DH chunk: keep the live (chunk, tb) f32 tile around <= 256 KiB.
    chunk = max(128, (256 * 1024) // (4 * tb) // 128 * 128)
    chunk = min(chunk, dh_pad)
    while dh_pad % chunk:                         # dh_pad is a multiple of 128
        chunk -= 128

    # ---- honest VMEM budget (weights double-buffered by the pipeline even
    # with a constant index_map; (DH,1) f32 columns are physically (DH,128)).
    lane_pad_col = dh_pad * 128 * 4
    vmem_est = (
        2 * tb * d_model * x.dtype.itemsize       # x tiles (double-buffered)
        + 2 * dh_pad * d_model * 2                # w1 (bf16, VMEM-resident)
        + 2 * 2 * lane_pad_col                    # b1 + folded-w2 columns
        + tb * d_model * 2                        # in-kernel bf16 copy of x
        + 3 * chunk * tb * 4                      # live chunk tile + GELU temps
        + 2 * 8 * tb * 4                          # (1, tb) output tiles
        + 64 * 1024                               # accumulator / misc
    )
    phys = _vmem_capacity_bytes()
    cap = min((phys * 3) // 4, 100 * 2 ** 20)     # ~48 MiB on v7x, ~96 MiB on v5e/v6e
    vmem_limit = int(min(max(2 * vmem_est, 32 * 2 ** 20), cap))

    vmem = pltpu.MemorySpace.VMEM
    smem = pltpu.MemorySpace.SMEM
    kernel = functools.partial(_esm_mlp_kernel, chunk=chunk,
                               approx_gelu=approx_gelu)

    out = pl.pallas_call(
        kernel,
        out_shape=jax.ShapeDtypeStruct((1, b_pad), jnp.float32),
        grid_spec=pltpu.PrefetchScalarGridSpec(
            num_scalar_prefetch=0,
            grid=(grid,),
            in_specs=[
                pl.BlockSpec((tb, d_model), lambda i: (i, 0), memory_space=vmem),
                pl.BlockSpec((dh_pad, d_model), lambda i: (0, 0), memory_space=vmem),
                pl.BlockSpec((dh_pad, 1), lambda i: (0, 0), memory_space=vmem),
                pl.BlockSpec((dh_pad, 1), lambda i: (0, 0), memory_space=vmem),
                pl.BlockSpec(memory_space=smem),          # b2 scalar in SMEM
            ],
            out_specs=pl.BlockSpec((1, tb), lambda i: (0, i), memory_space=vmem),
        ),
        compiler_params=pltpu.CompilerParams(
            dimension_semantics=("parallel",),
            vmem_limit_bytes=vmem_limit,
        ),
    )(x, w1t, b1c, w2c, b2_fold)

    # Lane-dense (1, b_pad) -> [B, 1]; pure layout plumbing in the wrapper.
    return out[0, :B].reshape(B, 1).astype(x.dtype)


def init_params(key, d_model, d_hidden, dtype=jnp.float32):
    """PyTorch-native layouts: Linear weights are [out_features, in_features]."""
    k1, k2, k3, k4, k5, k6, k7, k8 = jax.random.split(key, 8)
    lim1 = 1.0 / math.sqrt(d_model)
    w1 = jax.random.uniform(k1, (d_hidden, d_model), dtype, -lim1, lim1)
    b1 = jax.random.uniform(k2, (d_hidden,), dtype, -lim1, lim1)
    # Non-trivial BatchNorm state so the BN-fold path is actually exercised.
    gamma = jax.random.uniform(k3, (d_hidden,), dtype, 0.5, 1.5)
    beta = jax.random.uniform(k4, (d_hidden,), dtype, -0.5, 0.5)
    run_mean = jax.random.uniform(k5, (d_hidden,), dtype, -0.5, 0.5)
    run_var = jax.random.uniform(k6, (d_hidden,), dtype, 0.5, 1.5)
    lim2 = 1.0 / math.sqrt(d_hidden)
    w2 = jax.random.uniform(k7, (1, d_hidden), dtype, -lim2, lim2)
    b2 = jax.random.uniform(k8, (1,), dtype, -lim2, lim2)
    return (w1, b1, gamma, beta, run_mean, run_var, w2, b2)


def reference_forward(x, params):
    """Pure-JAX reference (eval mode), with fc1 operands rounded to bf16 like
    the kernel's MXU path (bf16 operands, f32 accumulation)."""
    w1, b1, gamma, beta, run_mean, run_var, w2, b2 = params
    f32 = jnp.float32
    xb = x.astype(jnp.bfloat16).astype(f32)
    w1b = w1.astype(jnp.bfloat16).astype(f32)
    h = jnp.dot(xb, w1b.T, preferred_element_type=f32) + b1
    h = 0.5 * h * (1.0 + lax.erf(h * _INV_SQRT2))
    h = (h - run_mean) / jnp.sqrt(run_var + 1e-5) * gamma + beta
    y = h @ w2.T + b2                 # dropout = identity in eval mode
    return 1.0 / (1.0 + jnp.exp(-y))


if __name__ == "__main__":
    B, d_model, d_hidden = 8, 32, 64
    key = jax.random.PRNGKey(0)
    kx, kp = jax.random.split(key)
    # Synthetic CLS-token representations (stand-in for encoder output [:, 0]).
    x = jax.random.normal(kx, (B, d_model), jnp.float32)
    params = init_params(kp, d_model, d_hidden)

    prepped = prepare_params(params)          # one-time prep, outside per-call path
    out = jax.block_until_ready(jax.jit(esm_mlp_forward)(x, prepped))
    ref = reference_forward(x, params)

    assert out.shape == (B, 1)
    assert jnp.allclose(out, ref, atol=2e-5, rtol=1e-4), float(
        jnp.max(jnp.abs(out - ref)))
    print("KERNEL_OK")
</pallas_src>

<mosaic_0001>
module attributes {stable_mosaic.version = 11 : i64} {
  func.func @_esm_mlp_kernel(%arg0: i32, %arg1: memref<8x32xf32, #tpu.memory_space<vmem>>, %arg2: memref<128x32xbf16, #tpu.memory_space<vmem>>, %arg3: memref<128x1xf32, #tpu.memory_space<vmem>>, %arg4: memref<128x1xf32, #tpu.memory_space<vmem>>, %arg5: memref<1x1xf32, #tpu.memory_space<smem>>, %arg6: memref<1x8xf32, #tpu.memory_space<vmem>>) attributes {dimension_semantics = [#tpu.dimension_semantics<parallel>], iteration_bounds = array<i64: 1>, scalar_prefetch = 0 : i64, scratch_operands = 0 : i64, tpu.core_type = #tpu.core_type<tc>, window_params = [{transform_indices = @transform_0, window_bounds = array<i64: 8, 32>}, {pipeline_mode = #tpu.pipeline_mode<synchronous>, transform_indices = @transform_1, window_bounds = array<i64: 128, 32>}, {pipeline_mode = #tpu.pipeline_mode<synchronous>, transform_indices = @transform_2, window_bounds = array<i64: 128, 1>}, {pipeline_mode = #tpu.pipeline_mode<synchronous>, transform_indices = @transform_3, window_bounds = array<i64: 128, 1>}, {transform_indices = @transform_4, window_bounds = array<i64: 1, 1>}, {transform_indices = @transform_5, window_bounds = array<i64: 1, 8>}]} {
    %c0 = arith.constant 0 : index
    %c0_0 = arith.constant 0 : index
    %0 = vector.load %arg1[%c0, %c0_0] : memref<8x32xf32, #tpu.memory_space<vmem>>, vector<8x32xf32>
    %1 = arith.truncf %0 : vector<8x32xf32> to vector<8x32xbf16>
    %cst = arith.constant 0.000000e+00 : f32
    %2 = vector.broadcast %cst : f32 to vector<1x8xf32>
    %c0_i32 = arith.constant 0 : i32
    %c128_i32 = arith.constant 128 : i32
    %3 = arith.muli %c0_i32, %c128_i32 : i32
    %4 = tpu.assume_multiple %3, 128 : i32
    %5 = arith.index_cast %4 : i32 to index
    %c0_1 = arith.constant 0 : index
    %6 = vector.load %arg2[%5, %c0_1] : memref<128x32xbf16, #tpu.memory_space<vmem>>, vector<128x32xbf16>
    %cst_2 = arith.constant dense<0.000000e+00> : vector<128x8xf32>
    %7 = tpu.matmul %6, %1, %cst_2 {dimension_numbers = #tpu.dot_dimension_numbers<[1], [1], [0], [0], [0, 0, 1, 0], [], []>} : vector<128x32xbf16>, vector<8x32xbf16>, vector<128x8xf32> -> vector<128x8xf32>
    %8 = arith.index_cast %4 : i32 to index
    %c0_3 = arith.constant 0 : index
    %9 = vector.load %arg3[%8, %c0_3] : memref<128x1xf32, #tpu.memory_space<vmem>>, vector<128x1xf32>
    %10 = vector.broadcast %9 : vector<128x1xf32> to vector<128x8xf32>
    %11 = arith.addf %7, %10 : vector<128x8xf32>
    %cst_4 = arith.constant 5.000000e-01 : f32
    %12 = vector.broadcast %cst_4 : f32 to vector<128x8xf32>
    %13 = arith.mulf %12, %11 : vector<128x8xf32>
    %cst_5 = arith.constant 0.707106769 : f32
    %14 = vector.broadcast %cst_5 : f32 to vector<128x8xf32>
    %15 = arith.mulf %11, %14 : vector<128x8xf32>
    %16 = math.erf %15 : vector<128x8xf32>
    %cst_6 = arith.constant 1.000000e+00 : f32
    %17 = vector.broadcast %cst_6 : f32 to vector<128x8xf32>
    %18 = arith.addf %17, %16 : vector<128x8xf32>
    %19 = arith.mulf %13, %18 : vector<128x8xf32>
    %20 = arith.index_cast %4 : i32 to index
    %c0_7 = arith.constant 0 : index
    %21 = vector.load %arg4[%20, %c0_7] : memref<128x1xf32, #tpu.memory_space<vmem>>, vector<128x1xf32>
    %22 = vector.broadcast %21 : vector<128x1xf32> to vector<128x8xf32>
    %23 = arith.mulf %19, %22 : vector<128x8xf32>
    %cst_8 = arith.constant dense<0.000000e+00> : vector<8xf32>
    %24 = vector.multi_reduction <add>, %23, %cst_8 [0] : vector<128x8xf32> to vector<8xf32>
    %25 = vector.shape_cast %24 : vector<8xf32> to vector<1x8xf32>
    %26 = arith.addf %2, %25 : vector<1x8xf32>
    %c1_i32 = arith.constant 1 : i32
    %c0_9 = arith.constant 0 : index
    %c0_10 = arith.constant 0 : index
    %27 = memref.load %arg5[%c0_9, %c0_10] : memref<1x1xf32, #tpu.memory_space<smem>>
    %28 = vector.broadcast %27 : f32 to vector<1x8xf32>
    %29 = arith.addf %26, %28 : vector<1x8xf32>
    %cst_11 = arith.constant 0.000000e+00 : f32
    %30 = vector.broadcast %cst_11 : f32 to vector<1x8xf32>
    %31 = arith.subf %30, %29 : vector<1x8xf32>
    %32 = math.exp %31 : vector<1x8xf32>
    %cst_12 = arith.constant 1.000000e+00 : f32
    %33 = vector.broadcast %cst_12 : f32 to vector<1x8xf32>
    %34 = arith.addf %33, %32 : vector<1x8xf32>
    %35 = tpu.reciprocal %34 : vector<1x8xf32> -> vector<1x8xf32>
    %c0_13 = arith.constant 0 : index
    %c0_14 = arith.constant 0 : index
    %36 = vector.load %arg6[%c0_13, %c0_14] : memref<1x8xf32, #tpu.memory_space<vmem>>, vector<1x8xf32>
    tpu.vector_store %arg6[%c0_13, %c0_14], %35 {strides = array<i32>} : memref<1x8xf32, #tpu.memory_space<vmem>>, vector<1x8xf32>,
    return
  }
  func.func @transform_0(%arg0: i32) -> (i32, i32) {
    %c0_i32 = arith.constant 0 : i32
    %c0_i32_0 = arith.constant 0 : i32
    return %arg0, %c0_i32 : i32, i32
  }
  func.func @transform_1(%arg0: i32) -> (i32, i32) {
    %c0_i32 = arith.constant 0 : i32
    %c0_i32_0 = arith.constant 0 : i32
    %c0_i32_1 = arith.constant 0 : i32
    return %c0_i32, %c0_i32_0 : i32, i32
  }
  func.func @transform_2(%arg0: i32) -> (i32, i32) {
    %c0_i32 = arith.constant 0 : i32
    %c0_i32_0 = arith.constant 0 : i32
    %c0_i32_1 = arith.constant 0 : i32
    return %c0_i32, %c0_i32_0 : i32, i32
  }
  func.func @transform_3(%arg0: i32) -> (i32, i32) {
    %c0_i32 = arith.constant 0 : i32
    %c0_i32_0 = arith.constant 0 : i32
    %c0_i32_1 = arith.constant 0 : i32
    return %c0_i32, %c0_i32_0 : i32, i32
  }
  func.func @transform_4(%arg0: i32) -> (i32, i32) {
    %c0_i32 = arith.constant 0 : i32
    %c0_i32_0 = arith.constant 0 : i32
    %c0_i32_1 = arith.constant 0 : i32
    return %c0_i32, %c0_i32_0 : i32, i32
  }
  func.func @transform_5(%arg0: i32) -> (i32, i32) {
    %c0_i32 = arith.constant 0 : i32
    %c0_i32_0 = arith.constant 0 : i32
    return %c0_i32, %arg0 : i32, i32
  }
}

</mosaic_0001>

<bundles_post_ra>
// kernel: esm_mlp_forward.1
= control target key start
LH: loop header
LB: loop body
LE: loop exit
PB: predicated region body
PF: predicated region fallthrough
CT: control target
= control target key end

     0   :  { %vm177_vm0 = vcmask 261120   ;;  %v674_v4 = vmov 0   ;;  %s920_s0 = inlined_call_operand.vmem [shape: f32[8,32], index: 0, kind: input, shape index: {}]   ;;  %s921_s1 = inlined_call_operand.vmem [shape: bf16[128,32], index: 1, kind: input, shape index: {}]   ;;  %s922_s2 = inlined_call_operand.vmem [shape: f32[128,1], index: 2, kind: input, shape index: {}]   ;;  %s923_s3 = inlined_call_operand.vmem [shape: f32[128,1], index: 3, kind: input, shape index: {}]   ;;  %s924_s4 = inlined_call_operand.<no memory space> [shape: f32[1,1], index: 4, kind: input, shape index: {}]   ;;  %s925_s5 = inlined_call_operand.hbm [shape: f32[1,8], index: 5, kind: output, shape index: {}]  }
   0x1   :  { %v23_v0 = vld [vmem:[%s920_s0] sm:$0xff]  ;;  %606 = vset.pattern.permute.xlu0 %v674_v4  ;;  %607 = vset.pattern.permute.xlu1 %v674_v4  ;;  %v43_v7 = vld [vmem:[%s922_s2 + $0x10] sm:$0xff]  ;;  %v610_v8 = vld [vmem:[%s921_s1 + $0x8] sm:$0xff]  }
   0x2   :  { %v24_v1 = vpack.c.bf16 %v23_v0, %v23_v0  ;;  %v608_v2 = vld [vmem:[%s921_s1] sm:$0xff]   ;;  %v611_v9 = vld [vmem:[%s921_s1 + $0x28] sm:$0xff]   ;;  %69 = vperm.xlu1 %607, %v43_v7   ;;  %v612_v11 = vld [vmem:[%s921_s1 + $0x10] sm:$0xff]  }
   0x3   :  { %v609_v3 = vld [vmem:[%s921_s1 + $0x20] sm:$0xff]   ;;  %584 = vmatprep.mubr.msk.bf16.mxu0 %vm177_vm0, %v608_v2  ;;  %v42_v10 = vld [vmem:[%s922_s2 + $0x8] sm:$0xff]  ;;  %v613_v12 = vld [vmem:[%s921_s1 + $0x30] sm:$0xff]  }
   0x4   :  { %602 = vmatprep.subr.msk.bf16.mxu0 %vm177_vm0, %v24_v1  ;;  %603 = vmatprep.subr.msk.bf16.mxu1 %vm177_vm0, %v24_v1  ;;  %v203_v5 = vsel %vm177_vm0, %v24_v1, 0  ;;  %v41_v6 = vld [vmem:[%s922_s2] sm:$0xff]  ;;  %v44_v13 = vld [vmem:[%s922_s2 + $0x18] sm:$0xff]  ;;  %v46_v15 = vld [vmem:[%s922_s2 + $0x28] sm:$0xff] }
   0x5   :  { %583 = vmatpush3.bf16.xpose.msra.mxu0 %v203_v5  ;;  %601 = vmatpush3.bf16.xpose.msra.mxu1 %v203_v5  ;;  %v45_v14 = vld [vmem:[%s922_s2 + $0x20] sm:$0xff]  ;;  %v614_v16 = vld [vmem:[%s921_s1 + $0x18] sm:$0xff]   ;;  %v47_v18 = vld [vmem:[%s922_s2 + $0x30] sm:$0xff] }
   0x6   :  { %592 = vmatprep.mubr.msk.bf16.mxu1 %vm177_vm0, %v609_v3  ;;  %59 = vperm.xlu0 %606, %v41_v6   ;;  %v615_v17 = vld [vmem:[%s921_s1 + $0x38] sm:$0xff]   ;;  %v49_v20 = vld [vmem:[%s922_s2 + $0x40] sm:$0xff]  ;;  %v50_v21 = vld [vmem:[%s922_s2 + $0x48] sm:$0xff] }
   0x7   :  { %74 = vperm.xlu1 %607, %v44_v13   ;;  %v48_v19 = vld [vmem:[%s922_s2 + $0x38] sm:$0xff] }
   0xa   :  { %64 = vperm.xlu0 %606, %v42_v10  }
   0xb   :  { %84 = vperm.xlu1 %607, %v46_v15  }
   0xc   :  { %585 = vmatmul.mubr.msk.bf16.vlgmr.msra.gmra.mxu0 %vm177_vm0, %v610_v8  ;;  %593 = vmatmul.mubr.msk.bf16.vlgmr.msra.gmra.mxu1 %vm177_vm0, %v611_v9 }
   0xd   :  { %588 = vmatprep.mubr.msk.bf16.mxu0 %vm177_vm0, %v612_v11  ;;  %596 = vmatprep.mubr.msk.bf16.mxu1 %vm177_vm0, %v613_v12 }
   0xe   :  { %79 = vperm.xlu0 %606, %v45_v14  }
   0xf   :  { %94 = vperm.xlu1 %607, %v48_v19  }
  0x12   :  { %89 = vperm.xlu0 %606, %v47_v18  }
  0x14   :  { %589 = vmatmul.mubr.msk.bf16.gmra.mxu0 %vm177_vm0, %v614_v16  ;;  %597 = vmatmul.mubr.msk.bf16.gmra.mxu1 %vm177_vm0, %v615_v17 }
  0x15   :  { %11 = vsyncpa [#allocation4], 0  ;;  %104 = vperm.xlu1 %607, %v50_v21   ;;  %v51_v22 = vld [vmem:[%s922_s2 + $0x50] sm:$0xff]  ;;  %v52_v23 = vld [vmem:[%s922_s2 + $0x58] sm:$0xff]  ;;  %vm494_vm1 = vcmask 64512   ;;  %s675_s20 = smov [#allocation3]  }
  0x16   :  { %99 = vperm.xlu0 %606, %v49_v20   ;;  %v53_v24 = vld [vmem:[%s922_s2 + $0x60] sm:$0xff]  ;;  %v383_v26 = vld [vmem:[%s923_s3 + $0x8] sm:$0xff]  ;;  %v384_v28 = vld [vmem:[%s923_s3 + $0x10] sm:$0xff]  ;;  %s549_s21 = sshll.u32 %s675_s20, 4  ;;  %vm541_vm2 = vcmask 57344   ;;  %s550_s21 = int_to_ptr.vmem [resolvable:$true] %s549_s21 }
  0x17   :  { %v382_v25 = vld [vmem:[%s923_s3] sm:$0xff]  ;;  %v54_v27 = vld [vmem:[%s922_s2 + $0x68] sm:$0xff]  ;;  %v55_v29 = vld [vmem:[%s922_s2 + $0x70] sm:$0xff]  ;;  %s652_s22 = scalar_lea.vmem %s550_s21, 16  ;;  %s656_s23 = scalar_lea.vmem %s550_s21, 32 }
  0x18   :  { %v385_v30 = vld [vmem:[%s923_s3 + $0x18] sm:$0xff]  ;;  %v386_v32 = vld [vmem:[%s923_s3 + $0x20] sm:$0xff]  ;;  %v387_v33 = vld [vmem:[%s923_s3 + $0x28] sm:$0xff]  ;;  %p653_p0 = scmp.ne.s32.totalorder %s550_s21, %s652_s22  ;;  %p657_p1 = scmp.lt.s32.totalorder %s550_s21, %s550_s21 }
  0x19   :  { %114 = vperm.xlu1 %607, %v52_v23   ;;  %v56_v31 = vld [vmem:[%s922_s2 + $0x78] sm:$0xff]  ;;  %v388_v34 = vld [vmem:[%s923_s3 + $0x30] sm:$0xff]  ;;  %v390_v36 = vld [vmem:[%s923_s3 + $0x40] sm:$0xff]  ;;  %p658_p2 = scmp.lt.s32.totalorder %s656_s23, %s652_s22 }
  0x1a   :  { %109 = vperm.xlu0 %606, %v51_v22   ;;  %v389_v35 = vld [vmem:[%s923_s3 + $0x38] sm:$0xff]  ;;  %v391_v37 = vld [vmem:[%s923_s3 + $0x48] sm:$0xff]  ;;  %v392_v38 = vld [vmem:[%s923_s3 + $0x50] sm:$0xff] }
  0x1b   :  { %v393_v39 = vld [vmem:[%s923_s3 + $0x58] sm:$0xff]  ;;  %v394_v40 = vld [vmem:[%s923_s3 + $0x60] sm:$0xff]  ;;  %v395_v41 = vld [vmem:[%s923_s3 + $0x68] sm:$0xff]  ;;  %p659_p3 = por %p658_p2, %p657_p1 }
  0x1c   :  { %v396_v42 = vld [vmem:[%s923_s3 + $0x70] sm:$0xff]  ;;  %v397_v43 = vld [vmem:[%s923_s3 + $0x78] sm:$0xff] }
  0x1d   :  { %400 = vperm.xlu1 %607, %v382_v25   ;;  %p660_p4 = pnand %p659_p3, %p653_p0 }
  0x1e   :  { %119 = vperm.xlu0 %606, %v53_v24  }
  0x21   :  { %124 = vperm.xlu1 %607, %v54_v27  }
  0x22   :  { %405 = vperm.xlu0 %606, %v383_v26  }
  0x25   :  { %129 = vperm.xlu1 %607, %v55_v29  }
  0x26   :  { %410 = vperm.xlu0 %606, %v384_v28  }
  0x29   :  { %134 = vperm.xlu1 %607, %v56_v31  }
  0x2a   :  { %415 = vperm.xlu0 %606, %v385_v30  }
  0x2d   :  { %425 = vperm.xlu1 %607, %v387_v33  }
  0x2e   :  { %420 = vperm.xlu0 %606, %v386_v32  }
  0x31   :  { %435 = vperm.xlu1 %607, %v389_v35  }
  0x32   :  { %430 = vperm.xlu0 %606, %v388_v34  }
  0x35   :  { %445 = vperm.xlu1 %607, %v391_v37  }
  0x36   :  { %440 = vperm.xlu0 %606, %v390_v36  }
  0x39   :  { %455 = vperm.xlu1 %607, %v393_v39  }
  0x3a   :  { %450 = vperm.xlu0 %606, %v392_v38  }
  0x3d   :  { %465 = vperm.xlu1 %607, %v395_v41  }
  0x3e   :  { %460 = vperm.xlu0 %606, %v394_v40  }
  0x41   :  { %475 = vperm.xlu1 %607, %v397_v43  }
  0x42   :  { %470 = vperm.xlu0 %606, %v396_v42  }
  0x7d   :  { %v70_v45 = vpop.permute.xlu1 %69 }
  0x81   :  { %v60_v44 = vpop.permute.xlu0 %59 }
  0x82   :  { %v75_v47 = vpop.permute.xlu1 %74 }
  0x85   :  { %v65_v46 = vpop.permute.xlu0 %64 }
  0x86   :  { %v85_v49 = vpop.permute.xlu1 %84 }
  0x89   :  { %v80_v48 = vpop.permute.xlu0 %79 }
  0x8a   :  { %v95_v51 = vpop.permute.xlu1 %94 }
  0x8d   :  { %v90_v50 = vpop.permute.xlu0 %89 }
  0x90   :  { %v105_v53 = vpop.permute.xlu1 %104 }
  0x91   :  { %v100_v52 = vpop.permute.xlu0 %99 }
  0x94   :  { %v115_v55 = vpop.permute.xlu1 %114 }
  0x95   :  { %v110_v54 = vpop.permute.xlu0 %109 }
  0x98   :  { %v840_v59 = vpop.permute.xlu1 %400 }
  0x99   :  { %v120_v56 = vpop.permute.xlu0 %119 }
  0x9c   :  { %v125_v8 = vpop.permute.xlu1 %124 }
  0x9d   :  { %v845_v3 = vpop.permute.xlu0 %405 }
  0xa0   :  { %v130_v23 = vpop.permute.xlu1 %129 }
  0xa1   :  { %v411_v19 = vpop.permute.xlu0 %410 }
  0xa4   :  { %v135_v40 = vpop.permute.xlu1 %134 }
  0xa5   :  { %v416_v34 = vpop.permute.xlu0 %415 }
  0xcc   :  { %v586_v57 = vpop.f32.mrf.mxu0  ;;  %v594_v58 = vpop.f32.mrf.mxu1 }
  0xcd   :  { %v842_v60 = vadd.f32 %v586_v57, %v70_v45  ;;  %v859_v25 = vadd.f32 %v594_v58, %v110_v54  ;;  %v426_v57 = vpop.permute.xlu1 %425 }
  0xce   :  { %v239_v61 = vpop.f32.mrf.mxu0  ;;  %v271_v62 = vpop.f32.mrf.mxu1 }
  0xcf   :  { %v320_v63 = vmul.f32 0.70710677, %v842_v60  ;;  %v240_v0 = vadd.f32 %v239_v61, %v60_v44  ;;  %v852_v17 = vadd.f32 %v271_v62, %v100_v52  ;;  %v328_v35 = vmul.f32 0.70710677, %v859_v25 }
  0xd0   :  { %v587_v1 = vpop.f32.mrf.mxu0  ;;  %v595_v2 = vpop.f32.mrf.mxu1 }
  0xd1   :  { %v847_v4 = vadd.f32 %v587_v1, %v75_v47  ;;  %616 = verf.f32 %v320_v63  ;;  %v318_v5 = vmul.f32 0.70710677, %v240_v0  ;;  %v326_v29 = vmul.f32 0.70710677, %v852_v17 }
  0xd2   :  { %v242_v6 = vpop.f32.mrf.mxu0  ;;  %v274_v7 = vpop.f32.mrf.mxu1  ;;  %v864_v32 = vadd.f32 %v595_v2, %v115_v55  ;;  %v302_v45 = vmul.f32 0.5, %v240_v0 }
  0xd3   :  { %v321_v9 = vmul.f32 0.70710677, %v847_v4  ;;  %618 = verf.f32 %v318_v5  ;;  %v243_v10 = vadd.f32 %v242_v6, %v65_v46  ;;  %v855_v20 = vadd.f32 %v274_v7, %v105_v53 }
  0xd4   :  { %v590_v11 = vpop.f32.mrf.mxu0  ;;  %v598_v12 = vpop.f32.mrf.mxu1  ;;  %v329_v42 = vmul.f32 0.70710677, %v864_v32  ;;  %v305_v61 = vmul.f32 0.5, %v847_v4 }
  0xd5   :  { %v850_v13 = vadd.f32 %v590_v11, %v90_v50  ;;  %620 = verf.f32 %v321_v9  ;;  %v319_v14 = vmul.f32 0.70710677, %v243_v10  ;;  %v327_v30 = vmul.f32 0.70710677, %v855_v20  ;;  %v421_v50 = vpop.permute.xlu0 %420 }
  0xd6   :  { %v255_v15 = vpop.f32.mrf.mxu0  ;;  %v287_v16 = vpop.f32.mrf.mxu1  ;;  %v303_v62 = vmul.f32 0.5, %v243_v10 }
  0xd7   :  { %v324_v18 = vmul.f32 0.70710677, %v850_v13  ;;  %622 = verf.f32 %v319_v14  ;;  %v256_v21 = vadd.f32 %v255_v15, %v80_v48  ;;  %v869_v38 = vadd.f32 %v287_v16, %v120_v56  ;;  %v436_v16 = vpop.permute.xlu1 %435 }
  0xd8   :  { %v591_v22 = vpop.f32.mrf.mxu0  ;;  %v599_v27 = vpop.f32.mrf.mxu1  ;;  %v875_v48 = vadd.f32 %v598_v12, %v130_v23 }
  0xd9   :  { %v857_v24 = vadd.f32 %v591_v22, %v95_v51  ;;  %v322_v26 = vmul.f32 0.70710677, %v256_v21  ;;  %624 = verf.f32 %v324_v18  ;;  %v304_v51 = vmul.f32 0.5, %v842_v60 }
  0xda   :  { %v258_v28 = vpop.f32.mrf.mxu0  ;;  %v290_v36 = vpop.f32.mrf.mxu1  ;;  %v879_v55 = vadd.f32 %v599_v27, %v135_v40  ;;  %v332_v0 = vmul.f32 0.70710677, %v875_v48  ;;  %v306_v12 = vmul.f32 0.5, %v256_v21 }
  0xdb   :  { %626 = verf.f32 %v322_v26  ;;  %v325_v31 = vmul.f32 0.70710677, %v857_v24  ;;  %v866_v33 = vadd.f32 %v258_v28, %v85_v49  ;;  %v873_v43 = vadd.f32 %v290_v36, %v125_v8  ;;  %v431_v8 = vpop.permute.xlu0 %430 }
  0xdc   :  { %v330_v49 = vmul.f32 0.70710677, %v869_v38  ;;  %v333_v7 = vmul.f32 0.70710677, %v879_v55 }
  0xdd   :  { %628 = verf.f32 %v325_v31  ;;  %v323_v39 = vmul.f32 0.70710677, %v866_v33  ;;  %v331_v56 = vmul.f32 0.70710677, %v873_v43  ;;  %v307_v31 = vmul.f32 0.5, %v866_v33 }
  0xde   :  { %v617_v37 = vpop.eup %616  ;;  %630 = verf.f32 %v326_v29 }
  0xdf   :  { %632 = verf.f32 %v327_v30  ;;  %v352_v44 = vadd.f32 1.0, %v617_v37  ;;  %v309_v30 = vmul.f32 0.5, %v857_v24  ;;  %v441_v40 = vpop.permute.xlu0 %440  ;;  %v311_v24 = vmul.f32 0.5, %v855_v20 }
  0xe0   :  { %v619_v41 = vpop.eup %618  ;;  %634 = verf.f32 %v323_v39 }
  0xe1   :  { %636 = verf.f32 %v328_v35  ;;  %v350_v46 = vadd.f32 1.0, %v619_v41  ;;  %v368_v58 = vmul.f32 %v352_v44, %v304_v51  ;;  %v310_v41 = vmul.f32 0.5, %v852_v17 }
  0xe2   :  { %v621_v47 = vpop.eup %620  ;;  %638 = verf.f32 %v329_v42  ;;  %v312_v17 = vmul.f32 0.5, %v859_v25 }
  0xe3   :  { %v366_v52 = vmul.f32 %v350_v46, %v302_v45  ;;  %v353_v53 = vadd.f32 1.0, %v621_v47  ;;  %640 = verf.f32 %v330_v49  ;;  %v480_v9 = vmul.f32 %v411_v19, %v368_v58  ;;  %v446_v49 = vpop.permute.xlu1 %445 }
  0xe4   :  { %v623_v54 = vpop.eup %622  ;;  %642 = verf.f32 %v331_v56  ;;  %v308_v19 = vmul.f32 0.5, %v850_v13 }
  0xe5   :  { %v351_v63 = vadd.f32 1.0, %v623_v54  ;;  %v478_v60 = vmul.f32 %v840_v59, %v366_v52  ;;  %v369_v2 = vmul.f32 %v353_v53, %v305_v61  ;;  %644 = verf.f32 %v332_v0 }
  0xe6   :  { %v625_v1 = vpop.eup %624  ;;  %646 = verf.f32 %v333_v7  ;;  %v498_v21 = vsel %vm494_vm1, %v480_v9, 0.0  ;;  %v314_v9 = vmul.f32 0.5, %v869_v38 }
  0xe7   :  { %v367_v5 = vmul.f32 %v351_v63, %v303_v62  ;;  %v356_v14 = vadd.f32 1.0, %v625_v1  ;;  %v495_v59 = vsel %vm494_vm1, %v478_v60, 0.0  ;;  %v481_v18 = vmul.f32 %v416_v34, %v369_v2  ;;  %v451_v1 = vpop.permute.xlu0 %450 }
  0xe8   :  { %v627_v6 = vpop.eup %626  ;;  %v313_v60 = vmul.f32 0.5, %v864_v32  ;;  %v315_v32 = vmul.f32 0.5, %v873_v43 }
  0xe9   :  { %v479_v11 = vmul.f32 %v845_v3, %v367_v5  ;;  %v354_v4 = vadd.f32 1.0, %v627_v6  ;;  %v372_v37 = vmul.f32 %v356_v14, %v308_v19  ;;  %v500_v13 = vsel %vm494_vm1, %v481_v18, 0.0 }
  0xea   :  { %v629_v10 = vpop.eup %628 }
  0xeb   :  { %v631_v15 = vpop.eup %630  ;;  %v496_v22 = vsel %vm494_vm1, %v479_v11, 0.0  ;;  %v370_v23 = vmul.f32 %v354_v4, %v306_v12  ;;  %v357_v28 = vadd.f32 1.0, %v629_v10  ;;  %v484_v52 = vmul.f32 %v431_v8, %v372_v37 }
  0xec   :  { %v633_v26 = vpop.eup %632  ;;  %v497_v27 = vadd.f32 %v496_v22, %v495_v59  ;;  %v358_v36 = vadd.f32 1.0, %v631_v15 }
  0xed   :  { %v635_v3 = vpop.eup %634  ;;  %v482_v29 = vmul.f32 %v421_v50, %v370_v23  ;;  %v359_v42 = vadd.f32 1.0, %v633_v26  ;;  %v373_v45 = vmul.f32 %v357_v28, %v309_v30  ;;  %v506_v6 = vsel %vm494_vm1, %v484_v52, 0.0  ;;  %v461_v23 = vpop.permute.xlu0 %460 }
  0xee   :  { %v637_v35 = vpop.eup %636  ;;  %v499_v34 = vadd.f32 %v498_v21, %v497_v27  ;;  %v355_v39 = vadd.f32 1.0, %v635_v3  ;;  %v374_v51 = vmul.f32 %v358_v36, %v310_v41  ;;  %v316_v26 = vmul.f32 0.5, %v875_v48 }
  0xef   :  { %v639_v47 = vpop.eup %638  ;;  %v360_v50 = vadd.f32 1.0, %v637_v35  ;;  %v502_v33 = vsel %vm494_vm1, %v482_v29, 0.0  ;;  %v375_v61 = vmul.f32 %v359_v42, %v311_v24  ;;  %v485_v62 = vmul.f32 %v436_v16, %v373_v45 }
  0xf0   :  { %v501_v44 = vadd.f32 %v500_v13, %v499_v34  ;;  %v371_v46 = vmul.f32 %v355_v39, %v307_v31  ;;  %v641_v56 = vpop.eup %640  ;;  %v361_v58 = vadd.f32 1.0, %v639_v47  ;;  %v486_v5 = vmul.f32 %v441_v40, %v374_v51 }
  0xf1   :  { %v643_v0 = vpop.eup %642  ;;  %v376_v20 = vmul.f32 %v360_v50, %v312_v17  ;;  %v362_v7 = vadd.f32 1.0, %v641_v56  ;;  %v487_v12 = vmul.f32 %v446_v49, %v375_v61  ;;  %v508_v4 = vsel %vm494_vm1, %v485_v62, 0.0  ;;  %v471_v48 = vpop.permute.xlu0 %470 }
  0xf2   :  { %v503_v53 = vadd.f32 %v502_v33, %v501_v44  ;;  %v483_v54 = vmul.f32 %v426_v57, %v371_v46  ;;  %v645_v8 = vpop.eup %644  ;;  %v456_v57 = vpop.permute.xlu1 %455  ;;  %v377_v11 = vmul.f32 %v361_v58, %v313_v60  ;;  %v363_v10 = vadd.f32 1.0, %v643_v0 }
  0xf3   :  { %v647_v14 = vpop.eup %646  ;;  %v488_v16 = vmul.f32 %v451_v1, %v376_v20  ;;  %v510_v59 = vsel %vm494_vm1, %v486_v5, 0.0  ;;  %v364_v18 = vadd.f32 1.0, %v645_v8  ;;  %v378_v22 = vmul.f32 %v362_v7, %v314_v9 }
  0xf4   :  { %v504_v63 = vsel %vm494_vm1, %v483_v54, 0.0  ;;  %v489_v38 = vmul.f32 %v456_v57, %v377_v11  ;;  %v512_v19 = vsel %vm494_vm1, %v487_v12, 0.0  ;;  %v365_v28 = vadd.f32 1.0, %v647_v14 }
  0xf5   :  { %v505_v2 = vadd.f32 %v504_v63, %v503_v53  ;;  %v379_v3 = vmul.f32 %v363_v10, %v315_v32  ;;  %v514_v30 = vsel %vm494_vm1, %v488_v16, 0.0  ;;  %v380_v31 = vmul.f32 %v364_v18, %v316_v26 }
  0xf6   :  { %v466_v21 = vpop.permute.xlu1 %465  ;;  %v490_v43 = vmul.f32 %v461_v23, %v378_v22  ;;  %v317_v35 = vmul.f32 0.5, %v879_v55  ;;  %v516_v34 = vsel %vm494_vm1, %v489_v38, 0.0  ;;  %v534_v56 = vstv %s924_s4 }
  0xf7   :  { %v507_v25 = vadd.f32 %v506_v6, %v505_v2  ;;  %v491_v39 = vmul.f32 %v466_v21, %v379_v3  ;;  %v492_v41 = vmul.f32 %v471_v48, %v380_v31 }
  0xf8   :  { %v381_v37 = vmul.f32 %v365_v28, %v317_v35  ;;  %v518_v13 = vsel %vm494_vm1, %v490_v43, 0.0 }
  0xf9   :  { %v509_v15 = vadd.f32 %v508_v4, %v507_v25  ;;  %v520_v46 = vsel %vm494_vm1, %v491_v39, 0.0  ;;  %v522_v49 = vsel %vm494_vm1, %v492_v41, 0.0 }
  0xfa   :  { %v476_v42 = vpop.permute.xlu1 %475 }
  0xfb   :  { %v511_v27 = vadd.f32 %v510_v59, %v509_v15  ;;  %v493_v45 = vmul.f32 %v476_v42, %v381_v37 }
  0xfd   :  { %v513_v29 = vadd.f32 %v512_v19, %v511_v27  ;;  %v524_v55 = vsel %vm494_vm1, %v493_v45, 0.0 }
  0xff   :  { %v515_v36 = vadd.f32 %v514_v30, %v513_v29 }
 0x101   :  { %v517_v40 = vadd.f32 %v516_v34, %v515_v36 }
 0x103   :  { %v519_v44 = vadd.f32 %v518_v13, %v517_v40 }
 0x105   :  { %v521_v47 = vadd.f32 %v520_v46, %v519_v44 }
 0x107   :  { %v523_v50 = vadd.f32 %v522_v49, %v521_v47 }
 0x109   :  { %v525_v24 = vadd.f32 %v524_v55, %v523_v50 }
 0x10b   :  { %v526_v33 = vrot.slane %v525_v24, 4 }
 0x10d   :  { %v527_v51 = vadd.f32 %v526_v33, %v525_v24 }
 0x10f   :  { %v528_v52 = vrot.slane %v527_v51, 2 }
 0x111   :  { %v529_v53 = vadd.f32 %v528_v52, %v527_v51 }
 0x113   :  { %v530_v54 = vrot.slane %v529_v53, 1 }
 0x115   :  { %v531_v17 = vadd.f32 %v530_v54, %v529_v53 }
 0x117   :  { %v535_v58 = vadd.f32 %v534_v56, %v531_v17 }
 0x119   :  { %v536_v61 = vsub.f32 0.0, %v535_v58 }
 0x11b   :  { %v537_v62 = vmul.f32 1.442695, %v536_v61 }
 0x11d   :  { %648 = vpow2.f32 %v537_v62 }
 0x12a   :  { %v649_v63 = vpop.eup %648 }
 0x12b   :  { %v539_v0 = vadd.f32 1.0, %v649_v63 }
 0x12d   :  { %650 = vrcp.f32 %v539_v0 }
 0x13a   :  { %v651_v1 = vpop.eup %650 }
 0x13b   :  { %542 = vst.msk [vmem:[#allocation3] sm:$0x1] %vm541_vm2, %v651_v1 }
 0x13c   :  { %663 = shalt.err (!%p660_p4)
}
 0x13d   :  { %552 = dma.vmem_to_hbm [thread:$0]  %s550_s21, 16, %s925_s5, [#allocation4]  }
 0x13e   :  { %672 = dma.done.wait [#allocation4], 16  }
 0x13f   :  { %673 = vsyncadd [#allocation4], 4294967280 }
 0x140   :  { %556 = vsyncpa [#allocation4], 1 }

</bundles_post_ra>
